<compile_context>
chip_gen: v6e
topology: v6e:2x2x1
jax: 0.10.0
libtpu: 0.0.40
codegen_flags: <defaults>
</compile_context>

<pallas_src>
import jax
import jax.numpy as jnp
import numpy as np
from jax.experimental import pallas as pl
from jax.experimental.pallas import tpu as pltpu

# ---- hyperparameters (torch.optim.Adam defaults + module defaults) ----------
LR = 0.01
BETA1 = 0.9
BETA2 = 0.999
EPS = 1e-8
CONVERGENCE_THRESHOLD = 1e-6
MAX_ITERATIONS = 100            # module default

# problem size: cartesian coordinates (row = atom, col = x/y/z)
N_ATOMS = 64
DIM = 3
N_ELEMS = N_ATOMS * DIM         # 192 valid elements per system

# batched layout: one system per sublane row, 256 lanes per system
SYS_ROWS = 8                    # systems per slab (sublane rows)
SYS_COLS = 256                  # lanes per system (>= 192, multiple of 128)
HIST_COLS = ((MAX_ITERATIONS + 127) // 128) * 128   # lane-dense history width

_VMEM = pl.BlockSpec(memory_space=pltpu.MemorySpace.VMEM)
_SMEM = pl.BlockSpec(memory_space=pltpu.MemorySpace.SMEM)


# --------------------------- Pallas kernels ----------------------------------

def _forward_kernel(x_ref, x0_ref, g_ref, nsq_ref):
    """forward(): geometry gradient + squared L2 norm, fused in one launch."""
    g = x_ref[...] - x0_ref[...]          # harmonic restraint gradient
    g_ref[...] = g
    nsq_ref[0] = jnp.sum(g * g)           # ||g||^2 (sqrt done host-side)


def _optimize_kernel(x_ref, x0_ref, p_out, best_out, hist_out, iters_out):
    """Entire optimize() loop, fully unrolled, for one slab of SYS_ROWS systems.

    x_ref, x0_ref   : VMEM (1, SYS_ROWS, SYS_COLS) f32 (params / reference)
    p_out, best_out : VMEM (1, SYS_ROWS, SYS_COLS) f32 (final / best params)
    hist_out        : VMEM (1, SYS_ROWS, HIST_COLS) f32 per-iteration ||g||^2
    iters_out       : VMEM (1, SYS_ROWS, 1) f32 iterations actually performed
    """
    x0 = x0_ref[...]
    p = x_ref[...]
    m = jnp.zeros_like(p)
    v = jnp.zeros_like(p)
    best_p = p

    rshape = (1, SYS_ROWS, 1)
    best_nsq = jnp.full(rshape, jnp.inf, dtype=jnp.float32)
    active = jnp.full(rshape, True, dtype=jnp.bool_)
    iters = jnp.zeros(rshape, dtype=jnp.float32)
    thresh_sq = CONVERGENCE_THRESHOLD * CONVERGENCE_THRESHOLD

    # Fully unrolled: i, bias corrections and LR are compile-time constants.
    for i in range(MAX_ITERATIONS):
        g = p - x0
        nsq = jnp.sum(g * g, axis=2, keepdims=True)      # per-system ||g||^2
        hist_out[:, :, pl.ds(i, 1)] = nsq                # off the serial chain

        # best-so-far bookkeeping (checked before the step, like the module)
        better = jnp.logical_and(active, nsq < best_nsq)
        best_p = jnp.where(better, p, best_p)
        best_nsq = jnp.where(better, nsq, best_nsq)
        iters = iters + active.astype(jnp.float32)

        not_conv = jnp.logical_not(nsq < thresh_sq)
        do_step = jnp.logical_and(active, not_conv)

        # Adam step; bias corrections (and LR) folded into immediates.
        t = i + 1
        c1 = LR / (1.0 - BETA1 ** t)
        c2 = 1.0 / (1.0 - BETA2 ** t)
        m_new = BETA1 * m + (1.0 - BETA1) * g
        v_new = BETA2 * v + (1.0 - BETA2) * (g * g)
        denom = jnp.sqrt(c2 * v_new) + EPS
        upd = (c1 * m_new) * pl.reciprocal(denom, approx=True)

        p = jnp.where(do_step, p - upd, p)
        m = jnp.where(do_step, m_new, m)
        v = jnp.where(do_step, v_new, v)
        active = jnp.logical_and(active, not_conv)

    p_out[...] = p
    best_out[...] = best_p
    iters_out[...] = iters


# --------------------------- layout helpers -----------------------------------

def _to_slabs(x):
    """(B, N_ATOMS, DIM) -> (num_slabs, SYS_ROWS, SYS_COLS); one system/row."""
    b = x.shape[0]
    num_slabs = -(-b // SYS_ROWS)
    flat = x.reshape(b, N_ELEMS).astype(jnp.float32)
    flat = jnp.pad(flat, ((0, num_slabs * SYS_ROWS - b), (0, SYS_COLS - N_ELEMS)))
    return flat.reshape(num_slabs, SYS_ROWS, SYS_COLS)


def _from_slabs(slabs, b):
    return slabs.reshape(-1, SYS_COLS)[:b, :N_ELEMS].reshape(b, N_ATOMS, DIM)


# --------------------------- wrappers ------------------------------------------

@jax.jit
def geometry_gradients_and_norm(x, x0):
    """Module forward(): return the gradient tensor (plus its L2 norm)."""
    xs = _to_slabs(x[None])[0]
    x0s = _to_slabs(x0[None])[0]
    g_slab, nsq = pl.pallas_call(
        _forward_kernel,
        out_shape=(
            jax.ShapeDtypeStruct((SYS_ROWS, SYS_COLS), jnp.float32),
            jax.ShapeDtypeStruct((1,), jnp.float32),
        ),
        in_specs=[_VMEM, _VMEM],
        out_specs=(_VMEM, _SMEM),
    )(xs, x0s)
    grad = g_slab[0, :N_ELEMS].reshape(N_ATOMS, DIM)
    return grad, jnp.sqrt(nsq[0])


@jax.jit
def optimize_batch(params, x0):
    """Whole optimize() loop for a batch of systems: a single pallas_call."""
    b = params.shape[0]
    xs = _to_slabs(params)
    x0s = _to_slabs(x0)
    num_slabs = xs.shape[0]

    slab_spec = pl.BlockSpec((1, SYS_ROWS, SYS_COLS), lambda s: (s, 0, 0))
    hist_spec = pl.BlockSpec((1, SYS_ROWS, HIST_COLS), lambda s: (s, 0, 0))
    iter_spec = pl.BlockSpec((1, SYS_ROWS, 1), lambda s: (s, 0, 0))

    p_s, best_s, hist_s, it_s = pl.pallas_call(
        _optimize_kernel,
        out_shape=(
            jax.ShapeDtypeStruct((num_slabs, SYS_ROWS, SYS_COLS), jnp.float32),
            jax.ShapeDtypeStruct((num_slabs, SYS_ROWS, SYS_COLS), jnp.float32),
            jax.ShapeDtypeStruct((num_slabs, SYS_ROWS, HIST_COLS), jnp.float32),
            jax.ShapeDtypeStruct((num_slabs, SYS_ROWS, 1), jnp.float32),
        ),
        grid=(num_slabs,),
        in_specs=[slab_spec, slab_spec],
        out_specs=(slab_spec, slab_spec, hist_spec, iter_spec),
        compiler_params=pltpu.CompilerParams(
            dimension_semantics=("parallel",)),   # shards slabs across TCs (v7x)
    )(xs, x0s)

    final_p = _from_slabs(p_s, b)
    best_p = _from_slabs(best_s, b)
    norms = jnp.sqrt(hist_s.reshape(-1, HIST_COLS)[:b, :MAX_ITERATIONS])
    iters = it_s.reshape(-1)[:b].astype(jnp.int32)
    return final_p, best_p, norms, iters


def optimize(params, x0):
    """Mirror of OptimizationClient.optimize() — one kernel launch total."""
    final_p, best_p, norms, iters = optimize_batch(params[None], x0[None])
    norms0 = np.asarray(jax.device_get(norms[0]))
    n_it = int(iters[0])
    history = [{"iteration": i, "gradient_norm": float(norms0[i])}
               for i in range(n_it)]
    final_norm = float(norms0[n_it - 1]) if n_it else float("inf")
    best_norm = float(norms0[:n_it].min()) if n_it else float("inf")
    return {
        "converged": final_norm < CONVERGENCE_THRESHOLD,
        "final_gradient_norm": final_norm,
        "best_gradient_norm": best_norm,
        "iterations": n_it,
        "best_parameters": best_p[0],      # module sets current <- best at end
        "final_parameters": final_p[0],
        "iteration_history": history,
    }


# --------------------------- main ----------------------------------------------

if __name__ == "__main__":
    key = jax.random.PRNGKey(0)
    k0, k1 = jax.random.split(key)
    B = 8
    params = jax.random.normal(k0, (B, N_ATOMS, DIM), dtype=jnp.float32)
    x0 = jax.random.normal(k1, (B, N_ATOMS, DIM), dtype=jnp.float32)
    # system 3 starts exactly at the reference -> exercises the convergence gate
    params = params.at[3].set(x0[3])

    # ---- forward pass (module.forward(): return gradient tensor) -------------
    grads, gnorm = geometry_gradients_and_norm(params[0], x0[0])
    jax.block_until_ready(grads)
    np.testing.assert_allclose(np.asarray(grads),
                               np.asarray(params[0] - x0[0]), atol=1e-6)
    np.testing.assert_allclose(float(gnorm),
                               float(jnp.linalg.norm(params[0] - x0[0])),
                               rtol=1e-5, atol=1e-6)

    # ---- full optimization loop: single on-device launch ----------------------
    final_p, best_p, norms, iters = optimize_batch(params, x0)
    jax.block_until_ready(final_p)

    # pure-numpy reference (torch.optim.Adam semantics), per system.
    # Tolerances account for the approx EUP reciprocal (<= ~2^-12 relative
    # per update, accumulated over <= 100 serial steps).
    P = np.asarray(params)
    X0 = np.asarray(x0)
    for s in range(B):
        p = P[s].astype(np.float64).copy()
        x0s = X0[s].astype(np.float64)
        m = np.zeros_like(p)
        v = np.zeros_like(p)
        best = p.copy()
        best_n = float("inf")
        ns = []
        for it in range(MAX_ITERATIONS):
            g = p - x0s
            n = float(np.linalg.norm(g))
            ns.append(n)
            if n < best_n:
                best_n = n
                best = p.copy()
            if n < CONVERGENCE_THRESHOLD:
                break
            t = it + 1
            m = BETA1 * m + (1 - BETA1) * g
            v = BETA2 * v + (1 - BETA2) * g * g
            mh = m / (1 - BETA1 ** t)
            vh = v / (1 - BETA2 ** t)
            p = p - LR * mh / (np.sqrt(vh) + EPS)
        n_it = len(ns)

        assert int(iters[s]) == n_it, (s, int(iters[s]), n_it)
        np.testing.assert_allclose(np.asarray(final_p[s]), p,
                                   atol=5e-3, rtol=1e-2)
        np.testing.assert_allclose(np.asarray(best_p[s]), best,
                                   atol=5e-3, rtol=1e-2)
        np.testing.assert_allclose(np.asarray(norms[s])[:n_it], np.asarray(ns),
                                   atol=1e-2, rtol=1e-2)

    # single-system convenience wrapper (mirrors module API)
    results = optimize(params[0], x0[0])
    assert results["iterations"] == int(iters[0])
    jax.block_until_ready(results["final_parameters"])

    print("KERNEL_OK")
</pallas_src>

<mosaic_0001>
module attributes {stable_mosaic.version = 11 : i64} {
  func.func @_forward_kernel(%arg0: memref<8x256xf32, #tpu.memory_space<vmem>>, %arg1: memref<8x256xf32, #tpu.memory_space<vmem>>, %arg2: memref<8x256xf32, #tpu.memory_space<vmem>>, %arg3: memref<1xf32, #tpu.memory_space<smem>>) attributes {dimension_semantics = [], scalar_prefetch = 0 : i64, scratch_operands = 0 : i64, tpu.core_type = #tpu.core_type<tc>} {
    %c0 = arith.constant 0 : index
    %c0_0 = arith.constant 0 : index
    %0 = vector.load %arg0[%c0, %c0_0] : memref<8x256xf32, #tpu.memory_space<vmem>>, vector<8x256xf32>
    %c0_1 = arith.constant 0 : index
    %c0_2 = arith.constant 0 : index
    %1 = vector.load %arg1[%c0_1, %c0_2] : memref<8x256xf32, #tpu.memory_space<vmem>>, vector<8x256xf32>
    %2 = arith.subf %0, %1 : vector<8x256xf32>
    %c0_3 = arith.constant 0 : index
    %c0_4 = arith.constant 0 : index
    %3 = vector.load %arg2[%c0_3, %c0_4] : memref<8x256xf32, #tpu.memory_space<vmem>>, vector<8x256xf32>
    tpu.vector_store %arg2[%c0_3, %c0_4], %2 {strides = array<i32>} : memref<8x256xf32, #tpu.memory_space<vmem>>, vector<8x256xf32>,
    %4 = arith.mulf %2, %2 : vector<8x256xf32>
    %5 = vector.shape_cast %4 : vector<8x256xf32> to vector<1x8x256xf32>
    %cst = arith.constant dense<0.000000e+00> : vector<1xf32>
    %6 = vector.multi_reduction <add>, %5, %cst [1, 2] : vector<1x8x256xf32> to vector<1xf32>
    %7 = vector.shape_cast %6 : vector<1xf32> to vector<1x1x1xf32>
    %8 = vector.extract %7[0, 0, 0] : f32 from vector<1x1x1xf32>
    %c0_5 = arith.constant 0 : index
    %9 = memref.load %arg3[%c0_5] : memref<1xf32, #tpu.memory_space<smem>>
    memref.store %8, %arg3[%c0_5] : memref<1xf32, #tpu.memory_space<smem>>
    return
  }
}

</mosaic_0001>

<bundles_post_ra>
// kernel: squeeze.2
= control target key start
LH: loop header
LB: loop body
LE: loop exit
PB: predicated region body
PF: predicated region fallthrough
CT: control target
= control target key end

     0   :  { %s544_s8 = smov 124   ;;  %s545_s9 = smov 125   ;;  %vm406_vm0 = vcmask 1031168   ;;  %vm8_vm1 = vcmask 23552   ;;  %vm410_vm2 = vcmask 15360   ;;  %vm413_vm3 = vcmask 23568   ;;  %s877_s0 = inlined_call_operand.vmem [shape: f32[192], index: 0, kind: input, shape index: {}]   ;;  %s878_s1 = inlined_call_operand.vmem [shape: f32[64,3], index: 1, kind: output, shape index: {}]  }
   0x1   :  { %v5_v0 = vld [vmem:[%s877_s0] sm:$0x3]  ;;  %s543_s0 = smov 127   ;;  %s546_s10 = smov 122  }
   0x2   :  { %6 = vst [vmem:[#allocation0] sm:$0x3] %v5_v0  ;;  %s547_s11 = smov 121   ;;  %s548_s12 = smov 119  }
   0x3   :  { %s549_s13 = smov 118   ;;  %s550_s14 = smov 116  }
   0x4   :  { %s551_s15 = smov 115   ;;  %s552_s16 = smov 113  }
   0x5   :  { %s553_s17 = smov 112   ;;  %s554_s18 = smov 110  }
   0x6   :  { %s555_s19 = smov 109   ;;  %s556_s20 = smov 107  }
   0x7   :  { %s557_s21 = smov 106   ;;  %s558_s22 = smov 104  }
   0x8   :  { %s559_s23 = smov 103   ;;  %s560_s24 = smov 101  }
   0x9   :  { %v11_v1 = vld [vmem:[#allocation0 + $0x1] sm:$0x1]   ;;  %v17_v3 = vld [vmem:[#allocation0] sm:$0x1]   ;;  %s561_s25 = smov 100   ;;  %s562_s26 = smov 98  }
   0xa   :  { %v24_v2 = vld [vmem:[#allocation0 + $0x1] sm:$0x1]   ;;  %12 = vrot.lane.b32.xlu0 %v11_v1, %s543_s0  ;;  %v30_v4 = vld [vmem:[#allocation0] sm:$0x1]   ;;  %s563_s27 = smov 97   ;;  %s564_s28 = smov 95  }
   0xb   :  { %25 = vrot.lane.b32.xlu1 %v24_v2, %s544_s8  ;;  %v37_v5 = vld [vmem:[#allocation0 + $0x1] sm:$0x1]   ;;  %v43_v6 = vld [vmem:[#allocation0] sm:$0x1]   ;;  %s565_s29 = smov 94   ;;  %s566_s30 = smov 92  }
   0xc   :  { %v50_v7 = vld [vmem:[#allocation0 + $0x1] sm:$0x1]   ;;  %v56_v8 = vld [vmem:[#allocation0] sm:$0x1]   ;;  %s567_s2 = smov 91   ;;  %s568_s3 = smov 89  }
   0xd   :  { %v63_v9 = vld [vmem:[#allocation0 + $0x1] sm:$0x1]   ;;  %v69_v10 = vld [vmem:[#allocation0] sm:$0x1]   ;;  %s569_s4 = smov 88   ;;  %s570_s5 = smov 86  }
   0xe   :  { %18 = vrot.lane.b32.xlu0 %v17_v3, %s545_s9  ;;  %v76_v11 = vld [vmem:[#allocation0 + $0x1] sm:$0x1]   ;;  %v82_v12 = vld [vmem:[#allocation0] sm:$0x1]   ;;  %s571_s6 = smov 85   ;;  %s572_s7 = smov 83  }
   0xf   :  { %31 = vrot.lane.b32.xlu1 %v30_v4, %s546_s10  ;;  %v89_v13 = vld [vmem:[#allocation0 + $0x1] sm:$0x1]   ;;  %v95_v14 = vld [vmem:[#allocation0] sm:$0x1]   ;;  %s573_s0 = smov 82   ;;  %s574_s8 = smov 80  }
  0x10   :  { %v102_v15 = vld [vmem:[#allocation0 + $0x1] sm:$0x1]   ;;  %v108_v16 = vld [vmem:[#allocation0] sm:$0x1]   ;;  %s575_s9 = smov 79   ;;  %s576_s10 = smov 77  }
  0x11   :  { %v115_v17 = vld [vmem:[#allocation0 + $0x1] sm:$0x1]   ;;  %v121_v18 = vld [vmem:[#allocation0] sm:$0x1]  }
  0x12   :  { %38 = vrot.lane.b32.xlu0 %v37_v5, %s547_s11  ;;  %v128_v19 = vld [vmem:[#allocation0 + $0x1] sm:$0x1]   ;;  %v134_v20 = vld [vmem:[#allocation0] sm:$0x1]   ;;  %s577_s11 = smov 2  }
  0x13   :  { %44 = vrot.lane.b32.xlu1 %v43_v6, %s548_s12  ;;  %v141_v21 = vld [vmem:[#allocation0 + $0x1] sm:$0x1]   ;;  %v147_v22 = vld [vmem:[#allocation0] sm:$0x1]   ;;  %s578_s12 = smov 76  }
  0x14   :  { %v154_v23 = vld [vmem:[#allocation0 + $0x1] sm:$0x1]   ;;  %v160_v24 = vld [vmem:[#allocation0] sm:$0x1]  }
  0x15   :  { %v167_v25 = vld [vmem:[#allocation0 + $0x1] sm:$0x1]   ;;  %v173_v26 = vld [vmem:[#allocation0] sm:$0x1]  }
  0x16   :  { %51 = vrot.lane.b32.xlu0 %v50_v7, %s549_s13  ;;  %v180_v27 = vld [vmem:[#allocation0 + $0x1] sm:$0x1]   ;;  %v186_v28 = vld [vmem:[#allocation0] sm:$0x1]   ;;  %s579_s13 = smov 74  }
  0x17   :  { %57 = vrot.lane.b32.xlu1 %v56_v8, %s550_s14  ;;  %v193_v29 = vld [vmem:[#allocation0 + $0x1] sm:$0x1]   ;;  %v199_v30 = vld [vmem:[#allocation0] sm:$0x1]   ;;  %s580_s14 = smov 73  }
  0x18   :  { %v206_v31 = vld [vmem:[#allocation0 + $0x1] sm:$0x1]   ;;  %v212_v32 = vld [vmem:[#allocation0] sm:$0x1]  }
  0x19   :  { %v219_v33 = vld [vmem:[#allocation0 + $0x1] sm:$0x1]   ;;  %v225_v34 = vld [vmem:[#allocation0] sm:$0x1]  }
  0x1a   :  { %64 = vrot.lane.b32.xlu0 %v63_v9, %s551_s15  ;;  %v403_v35 = vld [vmem:[#allocation0] sm:$0x1]   ;;  %v405_v36 = vld [vmem:[#allocation0 + $0x1] sm:$0x1]   ;;  %s581_s15 = smov 71  }
  0x1b   :  { %70 = vrot.lane.b32.xlu1 %v69_v10, %s552_s16  ;;  %v407_v37 = vsel %vm406_vm0, %v405_v36, %v403_v35  ;;  %v232_v38 = vld [vmem:[#allocation0 + $0x1] sm:$0x1]   ;;  %v238_v39 = vld [vmem:[#allocation0] sm:$0x1]   ;;  %s582_s16 = smov 70  }
  0x1c   :  { %v245_v40 = vld [vmem:[#allocation0 + $0x1] sm:$0x1]   ;;  %v251_v41 = vld [vmem:[#allocation0] sm:$0x1]  }
  0x1d   :  { %v258_v42 = vld [vmem:[#allocation0 + $0x1] sm:$0x1]   ;;  %v264_v43 = vld [vmem:[#allocation0] sm:$0x1]  }
  0x1e   :  { %77 = vrot.lane.b32.xlu0 %v76_v11, %s553_s17  ;;  %v271_v44 = vld [vmem:[#allocation0 + $0x1] sm:$0x1]   ;;  %s583_s17 = smov 68   ;;  %v277_v45 = vld [vmem:[#allocation0] sm:$0x1]  }
  0x1f   :  { %83 = vrot.lane.b32.xlu1 %v82_v12, %s554_s18  ;;  %s584_s18 = smov 67   ;;  %v283_v46 = vld [vmem:[#allocation0] sm:$0x1]  }
  0x20   :  { %v289_v47 = vld [vmem:[#allocation0] sm:$0x1]  }
  0x21   :  { %v295_v48 = vld [vmem:[#allocation0] sm:$0x1]  }
  0x22   :  { %90 = vrot.lane.b32.xlu0 %v89_v13, %s555_s19  ;;  %s585_s19 = smov 65   ;;  %v301_v49 = vld [vmem:[#allocation0] sm:$0x1]  }
  0x23   :  { %96 = vrot.lane.b32.xlu1 %v95_v14, %s556_s20  ;;  %s586_s20 = smov 62   ;;  %v307_v50 = vld [vmem:[#allocation0] sm:$0x1]  }
  0x24   :  { %v313_v51 = vld [vmem:[#allocation0] sm:$0x1]  }
  0x25   :  { %v319_v52 = vld [vmem:[#allocation0] sm:$0x1]  }
  0x26   :  { %103 = vrot.lane.b32.xlu0 %v102_v15, %s557_s21  ;;  %s587_s21 = smov 59   ;;  %v325_v53 = vld [vmem:[#allocation0] sm:$0x1]  }
  0x27   :  { %109 = vrot.lane.b32.xlu1 %v108_v16, %s558_s22  ;;  %s588_s22 = smov 56   ;;  %v331_v54 = vld [vmem:[#allocation0] sm:$0x1]  }
  0x28   :  { %v337_v55 = vld [vmem:[#allocation0] sm:$0x1]  }
  0x29   :  { %v343_v56 = vld [vmem:[#allocation0] sm:$0x1]  }
  0x2a   :  { %116 = vrot.lane.b32.xlu0 %v115_v17, %s559_s23  ;;  %s589_s23 = smov 53   ;;  %v349_v57 = vld [vmem:[#allocation0] sm:$0x1]  }
  0x2b   :  { %122 = vrot.lane.b32.xlu1 %v121_v18, %s560_s24  ;;  %s590_s24 = smov 50   ;;  %v355_v58 = vld [vmem:[#allocation0] sm:$0x1]  }
  0x2c   :  { %v361_v59 = vld [vmem:[#allocation0] sm:$0x1]  }
  0x2d   :  { %v367_v60 = vld [vmem:[#allocation0] sm:$0x1]  }
  0x2e   :  { %129 = vrot.lane.b32.xlu0 %v128_v19, %s561_s25  ;;  %s591_s25 = smov 47   ;;  %v7_v61 = vld [vmem:[#allocation0] sm:$0x1]  }
  0x2f   :  { %135 = vrot.lane.b32.xlu1 %v134_v20, %s562_s26  ;;  %s592_s26 = smov 44   ;;  %9 = vst.msk [vmem:[%s878_s1] sm:$0x1] %vm8_vm1, %v7_v61   ;;  %v373_v62 = vld [vmem:[#allocation0] sm:$0x1]  }
  0x30   :  { %v379_v63 = vld [vmem:[#allocation0] sm:$0x1]  }
  0x31   :  { %v385_v2 = vld [vmem:[#allocation0] sm:$0x1]  }
  0x32   :  { %142 = vrot.lane.b32.xlu0 %v141_v21, %s563_s27  ;;  %s593_s27 = smov 41   ;;  %v391_v3 = vld [vmem:[#allocation0] sm:$0x1]  }
  0x33   :  { %148 = vrot.lane.b32.xlu1 %v147_v22, %s564_s28  ;;  %s594_s28 = smov 38   ;;  %v397_v6 = vld [vmem:[#allocation0] sm:$0x1]  }
  0x36   :  { %155 = vrot.lane.b32.xlu0 %v154_v23, %s565_s29  ;;  %s595_s29 = smov 35  }
  0x37   :  { %161 = vrot.lane.b32.xlu1 %v160_v24, %s566_s30  ;;  %s596_s30 = smov 32  }
  0x3a   :  { %168 = vrot.lane.b32.xlu0 %v167_v25, %s567_s2  ;;  %s597_s2 = smov 29  }
  0x3b   :  { %174 = vrot.lane.b32.xlu1 %v173_v26, %s568_s3  ;;  %s598_s3 = smov 26  }
  0x3e   :  { %181 = vrot.lane.b32.xlu0 %v180_v27, %s569_s4 }
  0x3f   :  { %187 = vrot.lane.b32.xlu1 %v186_v28, %s570_s5 }
  0x42   :  { %194 = vrot.lane.b32.xlu0 %v193_v29, %s571_s6  ;;  %s599_s6 = smov 23  }
  0x43   :  { %200 = vrot.lane.b32.xlu1 %v199_v30, %s572_s7  ;;  %s600_s7 = smov 20  }
  0x46   :  { %207 = vrot.lane.b32.xlu0 %v206_v31, %s573_s0 }
  0x47   :  { %213 = vrot.lane.b32.xlu1 %v212_v32, %s574_s8 }
  0x4a   :  { %220 = vrot.lane.b32.xlu0 %v219_v33, %s575_s9 }
  0x4b   :  { %226 = vrot.lane.b32.xlu1 %v225_v34, %s576_s10 }
  0x4e   :  { %408 = vrot.lane.b32.xlu0 %v407_v37, %s577_s11  ;;  %s601_s11 = smov 17  }
  0x4f   :  { %233 = vrot.lane.b32.xlu1 %v232_v38, %s578_s12  ;;  %s602_s12 = smov 14  }
  0x52   :  { %239 = vrot.lane.b32.xlu0 %v238_v39, %s579_s13 }
  0x53   :  { %246 = vrot.lane.b32.xlu1 %v245_v40, %s580_s14 }
  0x56   :  { %252 = vrot.lane.b32.xlu0 %v251_v41, %s581_s15 }
  0x57   :  { %259 = vrot.lane.b32.xlu1 %v258_v42, %s582_s16 }
  0x5a   :  { %265 = vrot.lane.b32.xlu0 %v264_v43, %s583_s17  ;;  %s603_s17 = smov 11  }
  0x5b   :  { %272 = vrot.lane.b32.xlu1 %v271_v44, %s584_s18  ;;  %s604_s18 = smov 8  }
  0x5e   :  { %278 = vrot.lane.b32.xlu0 %v277_v45, %s585_s19 }
  0x5f   :  { %284 = vrot.lane.b32.xlu1 %v283_v46, %s586_s20 }
  0x62   :  { %290 = vrot.lane.b32.xlu0 %v289_v47, %s587_s21 }
  0x63   :  { %296 = vrot.lane.b32.xlu1 %v295_v48, %s588_s22 }
  0x66   :  { %302 = vrot.lane.b32.xlu0 %v301_v49, %s589_s23  ;;  %s605_s23 = smov 5  }
  0x67   :  { %308 = vrot.lane.b32.xlu1 %v307_v50, %s590_s24 }
  0x6a   :  { %314 = vrot.lane.b32.xlu0 %v313_v51, %s591_s25 }
  0x6b   :  { %320 = vrot.lane.b32.xlu1 %v319_v52, %s592_s26 }
  0x6e   :  { %326 = vrot.lane.b32.xlu0 %v325_v53, %s593_s27 }
  0x6f   :  { %332 = vrot.lane.b32.xlu1 %v331_v54, %s594_s28 }
  0x72   :  { %338 = vrot.lane.b32.xlu0 %v337_v55, %s595_s29 }
  0x73   :  { %344 = vrot.lane.b32.xlu1 %v343_v56, %s596_s30 }
  0x76   :  { %350 = vrot.lane.b32.xlu0 %v349_v57, %s597_s2 }
  0x77   :  { %356 = vrot.lane.b32.xlu1 %v355_v58, %s598_s3 }
  0x7a   :  { %362 = vrot.lane.b32.xlu0 %v361_v59, %s599_s6 }
  0x7b   :  { %368 = vrot.lane.b32.xlu1 %v367_v60, %s600_s7 }
  0x7c   :  { %v13_v0 = vpop.permute.xlu0 %12  }
  0x7d   :  { %v26_v1 = vpop.permute.xlu1 %25   ;;  %416 = vst.msk [vmem:[%s878_s1 + $0x2b] sm:$0x1] %vm8_vm1, %v13_v0  }
  0x7e   :  { %418 = vst.msk [vmem:[%s878_s1 + $0x2c] sm:$0x1] %vm8_vm1, %v26_v1   ;;  %374 = vrot.lane.b32.xlu0 %v373_v62, %s601_s11 }
  0x7f   :  { %380 = vrot.lane.b32.xlu1 %v379_v63, %s602_s12 }
  0x80   :  { %v19_v4 = vpop.permute.xlu0 %18  }
  0x81   :  { %v32_v5 = vpop.permute.xlu1 %31   ;;  %417 = vst.msk [vmem:[%s878_s1 + $0x1] sm:$0x1] %vm8_vm1, %v19_v4  }
  0x82   :  { %419 = vst.msk [vmem:[%s878_s1 + $0x2] sm:$0x1] %vm8_vm1, %v32_v5   ;;  %386 = vrot.lane.b32.xlu0 %v385_v2, %s603_s17 }
  0x83   :  { %392 = vrot.lane.b32.xlu1 %v391_v3, %s604_s18 }
  0x84   :  { %v39_v7 = vpop.permute.xlu0 %38  }
  0x85   :  { %v45_v8 = vpop.permute.xlu1 %44   ;;  %420 = vst.msk [vmem:[%s878_s1 + $0x2d] sm:$0x1] %vm8_vm1, %v39_v7  }
  0x86   :  { %421 = vst.msk [vmem:[%s878_s1 + $0x3] sm:$0x1] %vm8_vm1, %v45_v8   ;;  %398 = vrot.lane.b32.xlu0 %v397_v6, %s605_s23 }
  0x88   :  { %v52_v9 = vpop.permute.xlu0 %51  }
  0x89   :  { %v58_v10 = vpop.permute.xlu1 %57   ;;  %422 = vst.msk [vmem:[%s878_s1 + $0x2e] sm:$0x1] %vm8_vm1, %v52_v9  }
  0x8a   :  { %423 = vst.msk [vmem:[%s878_s1 + $0x4] sm:$0x1] %vm8_vm1, %v58_v10  }
  0x8c   :  { %v65_v11 = vpop.permute.xlu0 %64  }
  0x8d   :  { %v71_v12 = vpop.permute.xlu1 %70   ;;  %424 = vst.msk [vmem:[%s878_s1 + $0x2f] sm:$0x1] %vm8_vm1, %v65_v11  }
  0x8e   :  { %425 = vst.msk [vmem:[%s878_s1 + $0x5] sm:$0x1] %vm8_vm1, %v71_v12  }
  0x90   :  { %v78_v13 = vpop.permute.xlu0 %77  }
  0x91   :  { %v84_v14 = vpop.permute.xlu1 %83   ;;  %426 = vst.msk [vmem:[%s878_s1 + $0x30] sm:$0x1] %vm8_vm1, %v78_v13  }
  0x92   :  { %427 = vst.msk [vmem:[%s878_s1 + $0x6] sm:$0x1] %vm8_vm1, %v84_v14  }
  0x94   :  { %v91_v15 = vpop.permute.xlu0 %90  }
  0x95   :  { %v97_v16 = vpop.permute.xlu1 %96   ;;  %428 = vst.msk [vmem:[%s878_s1 + $0x31] sm:$0x1] %vm8_vm1, %v91_v15  }
  0x96   :  { %429 = vst.msk [vmem:[%s878_s1 + $0x7] sm:$0x1] %vm8_vm1, %v97_v16  }
  0x98   :  { %v104_v17 = vpop.permute.xlu0 %103  }
  0x99   :  { %v110_v18 = vpop.permute.xlu1 %109   ;;  %430 = vst.msk [vmem:[%s878_s1 + $0x32] sm:$0x1] %vm8_vm1, %v104_v17  }
  0x9a   :  { %431 = vst.msk [vmem:[%s878_s1 + $0x8] sm:$0x1] %vm8_vm1, %v110_v18  }
  0x9c   :  { %v117_v19 = vpop.permute.xlu0 %116  }
  0x9d   :  { %v123_v20 = vpop.permute.xlu1 %122   ;;  %432 = vst.msk [vmem:[%s878_s1 + $0x33] sm:$0x1] %vm8_vm1, %v117_v19  }
  0x9e   :  { %433 = vst.msk [vmem:[%s878_s1 + $0x9] sm:$0x1] %vm8_vm1, %v123_v20  }
  0xa0   :  { %v130_v21 = vpop.permute.xlu0 %129  }
  0xa1   :  { %v136_v22 = vpop.permute.xlu1 %135   ;;  %434 = vst.msk [vmem:[%s878_s1 + $0x34] sm:$0x1] %vm8_vm1, %v130_v21  }
  0xa2   :  { %435 = vst.msk [vmem:[%s878_s1 + $0xa] sm:$0x1] %vm8_vm1, %v136_v22  }
  0xa4   :  { %v143_v23 = vpop.permute.xlu0 %142  }
  0xa5   :  { %v149_v24 = vpop.permute.xlu1 %148   ;;  %436 = vst.msk [vmem:[%s878_s1 + $0x35] sm:$0x1] %vm8_vm1, %v143_v23  }
  0xa6   :  { %437 = vst.msk [vmem:[%s878_s1 + $0xb] sm:$0x1] %vm8_vm1, %v149_v24  }
  0xa8   :  { %v156_v25 = vpop.permute.xlu0 %155  }
  0xa9   :  { %v162_v26 = vpop.permute.xlu1 %161   ;;  %438 = vst.msk [vmem:[%s878_s1 + $0x36] sm:$0x1] %vm8_vm1, %v156_v25  }
  0xaa   :  { %439 = vst.msk [vmem:[%s878_s1 + $0xc] sm:$0x1] %vm8_vm1, %v162_v26  }
  0xac   :  { %v169_v27 = vpop.permute.xlu0 %168  }
  0xad   :  { %v175_v28 = vpop.permute.xlu1 %174   ;;  %440 = vst.msk [vmem:[%s878_s1 + $0x37] sm:$0x1] %vm8_vm1, %v169_v27  }
  0xae   :  { %441 = vst.msk [vmem:[%s878_s1 + $0xd] sm:$0x1] %vm8_vm1, %v175_v28  }
  0xb0   :  { %v182_v29 = vpop.permute.xlu0 %181  }
  0xb1   :  { %v188_v30 = vpop.permute.xlu1 %187   ;;  %442 = vst.msk [vmem:[%s878_s1 + $0x38] sm:$0x1] %vm8_vm1, %v182_v29  }
  0xb2   :  { %443 = vst.msk [vmem:[%s878_s1 + $0xe] sm:$0x1] %vm8_vm1, %v188_v30  }
  0xb4   :  { %v195_v31 = vpop.permute.xlu0 %194  }
  0xb5   :  { %v201_v32 = vpop.permute.xlu1 %200   ;;  %444 = vst.msk [vmem:[%s878_s1 + $0x39] sm:$0x1] %vm8_vm1, %v195_v31  }
  0xb6   :  { %445 = vst.msk [vmem:[%s878_s1 + $0xf] sm:$0x1] %vm8_vm1, %v201_v32  }
  0xb8   :  { %v208_v33 = vpop.permute.xlu0 %207  }
  0xb9   :  { %v214_v34 = vpop.permute.xlu1 %213   ;;  %446 = vst.msk [vmem:[%s878_s1 + $0x3a] sm:$0x1] %vm8_vm1, %v208_v33  }
  0xba   :  { %447 = vst.msk [vmem:[%s878_s1 + $0x10] sm:$0x1] %vm8_vm1, %v214_v34  }
  0xbc   :  { %v221_v35 = vpop.permute.xlu0 %220  }
  0xbd   :  { %v227_v36 = vpop.permute.xlu1 %226   ;;  %448 = vst.msk [vmem:[%s878_s1 + $0x3b] sm:$0x1] %vm8_vm1, %v221_v35  }
  0xbe   :  { %449 = vst.msk [vmem:[%s878_s1 + $0x11] sm:$0x1] %vm8_vm1, %v227_v36  }
  0xc0   :  { %v409_v37 = vpop.permute.xlu0 %408  }
  0xc1   :  { %v234_v38 = vpop.permute.xlu1 %233   ;;  %478 = vst.msk [vmem:[%s878_s1 + $0x2a] sm:$0x1] %vm410_vm2, %v409_v37  }
  0xc2   :  { %450 = vst.msk [vmem:[%s878_s1 + $0x3c] sm:$0x1] %vm8_vm1, %v234_v38  }
  0xc3   :  { %479 = vst.msk [vmem:[%s878_s1 + $0x2a] sm:$0x1] %vm413_vm3, %v409_v37  }
  0xc4   :  { %v240_v39 = vpop.permute.xlu0 %239  }
  0xc5   :  { %v247_v40 = vpop.permute.xlu1 %246   ;;  %451 = vst.msk [vmem:[%s878_s1 + $0x12] sm:$0x1] %vm8_vm1, %v240_v39  }
  0xc6   :  { %452 = vst.msk [vmem:[%s878_s1 + $0x3d] sm:$0x1] %vm8_vm1, %v247_v40  }
  0xc8   :  { %v253_v41 = vpop.permute.xlu0 %252  }
  0xc9   :  { %v260_v42 = vpop.permute.xlu1 %259   ;;  %453 = vst.msk [vmem:[%s878_s1 + $0x13] sm:$0x1] %vm8_vm1, %v253_v41  }
  0xca   :  { %454 = vst.msk [vmem:[%s878_s1 + $0x3e] sm:$0x1] %vm8_vm1, %v260_v42  }
  0xcc   :  { %v266_v43 = vpop.permute.xlu0 %265  }
  0xcd   :  { %v273_v44 = vpop.permute.xlu1 %272   ;;  %455 = vst.msk [vmem:[%s878_s1 + $0x14] sm:$0x1] %vm8_vm1, %v266_v43  }
  0xce   :  { %456 = vst.msk [vmem:[%s878_s1 + $0x3f] sm:$0x1] %vm8_vm1, %v273_v44  }
  0xd0   :  { %v279_v45 = vpop.permute.xlu0 %278  }
  0xd1   :  { %v285_v46 = vpop.permute.xlu1 %284   ;;  %457 = vst.msk [vmem:[%s878_s1 + $0x15] sm:$0x1] %vm8_vm1, %v279_v45  }
  0xd2   :  { %458 = vst.msk [vmem:[%s878_s1 + $0x16] sm:$0x1] %vm8_vm1, %v285_v46  }
  0xd4   :  { %v291_v47 = vpop.permute.xlu0 %290  }
  0xd5   :  { %v297_v48 = vpop.permute.xlu1 %296   ;;  %459 = vst.msk [vmem:[%s878_s1 + $0x17] sm:$0x1] %vm8_vm1, %v291_v47  }
  0xd6   :  { %460 = vst.msk [vmem:[%s878_s1 + $0x18] sm:$0x1] %vm8_vm1, %v297_v48  }
  0xd8   :  { %v303_v49 = vpop.permute.xlu0 %302  }
  0xd9   :  { %v309_v50 = vpop.permute.xlu1 %308   ;;  %461 = vst.msk [vmem:[%s878_s1 + $0x19] sm:$0x1] %vm8_vm1, %v303_v49  }
  0xda   :  { %462 = vst.msk [vmem:[%s878_s1 + $0x1a] sm:$0x1] %vm8_vm1, %v309_v50  }
  0xdc   :  { %v315_v51 = vpop.permute.xlu0 %314  }
  0xdd   :  { %v321_v52 = vpop.permute.xlu1 %320   ;;  %463 = vst.msk [vmem:[%s878_s1 + $0x1b] sm:$0x1] %vm8_vm1, %v315_v51  }
  0xde   :  { %464 = vst.msk [vmem:[%s878_s1 + $0x1c] sm:$0x1] %vm8_vm1, %v321_v52  }
  0xe0   :  { %v327_v53 = vpop.permute.xlu0 %326  }
  0xe1   :  { %v333_v54 = vpop.permute.xlu1 %332   ;;  %465 = vst.msk [vmem:[%s878_s1 + $0x1d] sm:$0x1] %vm8_vm1, %v327_v53  }
  0xe2   :  { %466 = vst.msk [vmem:[%s878_s1 + $0x1e] sm:$0x1] %vm8_vm1, %v333_v54  }
  0xe4   :  { %v339_v55 = vpop.permute.xlu0 %338  }
  0xe5   :  { %v345_v56 = vpop.permute.xlu1 %344   ;;  %467 = vst.msk [vmem:[%s878_s1 + $0x1f] sm:$0x1] %vm8_vm1, %v339_v55  }
  0xe6   :  { %468 = vst.msk [vmem:[%s878_s1 + $0x20] sm:$0x1] %vm8_vm1, %v345_v56  }
  0xe8   :  { %v351_v57 = vpop.permute.xlu0 %350  }
  0xe9   :  { %v357_v58 = vpop.permute.xlu1 %356   ;;  %469 = vst.msk [vmem:[%s878_s1 + $0x21] sm:$0x1] %vm8_vm1, %v351_v57  }
  0xea   :  { %470 = vst.msk [vmem:[%s878_s1 + $0x22] sm:$0x1] %vm8_vm1, %v357_v58  }
  0xec   :  { %v363_v59 = vpop.permute.xlu0 %362  }
  0xed   :  { %v369_v60 = vpop.permute.xlu1 %368   ;;  %471 = vst.msk [vmem:[%s878_s1 + $0x23] sm:$0x1] %vm8_vm1, %v363_v59  }
  0xee   :  { %472 = vst.msk [vmem:[%s878_s1 + $0x24] sm:$0x1] %vm8_vm1, %v369_v60  }
  0xf0   :  { %v375_v61 = vpop.permute.xlu0 %374  }
  0xf1   :  { %v381_v62 = vpop.permute.xlu1 %380   ;;  %473 = vst.msk [vmem:[%s878_s1 + $0x25] sm:$0x1] %vm8_vm1, %v375_v61  }
  0xf2   :  { %474 = vst.msk [vmem:[%s878_s1 + $0x26] sm:$0x1] %vm8_vm1, %v381_v62  }
  0xf4   :  { %v387_v63 = vpop.permute.xlu0 %386  }
  0xf5   :  { %v393_v0 = vpop.permute.xlu1 %392   ;;  %475 = vst.msk [vmem:[%s878_s1 + $0x27] sm:$0x1] %vm8_vm1, %v387_v63  }
  0xf6   :  { %476 = vst.msk [vmem:[%s878_s1 + $0x28] sm:$0x1] %vm8_vm1, %v393_v0  }
  0xf8   :  { %v399_v1 = vpop.permute.xlu0 %398  }
  0xf9   :  { %477 = vst.msk [vmem:[%s878_s1 + $0x29] sm:$0x1] %vm8_vm1, %v399_v1  }

// kernel: geometry_gradients_and_norm.1
= control target key start
LH: loop header
LB: loop body
LE: loop exit
PB: predicated region body
PF: predicated region fallthrough
CT: control target
= control target key end

     0   :  { %s108_s0 = inlined_call_operand.vmem [shape: f32[8,256], index: 0, kind: input, shape index: {}]   ;;  %s109_s1 = inlined_call_operand.vmem [shape: f32[8,256], index: 1, kind: input, shape index: {}]   ;;  %s110_s2 = inlined_call_operand.vmem [shape: f32[8,256], index: 2, kind: output, shape index: {0}]   ;;  %s111_s3 = inlined_call_operand.hbm [shape: f32[1], index: 3, kind: output, shape index: {1}]  }
   0x1   :  { %v14_v0 = vld [vmem:[%s108_s0] sm:$0xff]  ;;  %v15_v1 = vld [vmem:[%s108_s0 + $0x8] sm:$0xff] }
   0x2   :  { %v16_v2 = vld [vmem:[%s109_s1] sm:$0xff]  ;;  %v17_v3 = vld [vmem:[%s109_s1 + $0x8] sm:$0xff] }
   0x3   :  { %v18_v4 = vsub.f32 %v14_v0, %v16_v2 }
   0x4   :  { %9 = vsyncpa [#allocation3], 0  ;;  %v19_v5 = vsub.f32 %v15_v1, %v17_v3  ;;  %s66_s1 = smov [#allocation2]  }
   0x5   :  { %20 = vst [vmem:[%s110_s2] sm:$0xff] %v18_v4  ;;  %v22_v6 = vmul.f32 %v18_v4, %v18_v4 }
   0x6   :  { %21 = vst [vmem:[%s110_s2 + $0x8] sm:$0xff] %v19_v5  ;;  %v23_v7 = vmul.f32 %v19_v5, %v19_v5 }
   0x8   :  { %v24_v8 = vadd.f32 %v23_v7, %v22_v6 }
   0xa   :  { %25 = vadd.xlane.f32.xlu0 %v24_v8 }
  0x93   :  { %v26_v9 = vpop.xlane.xlu0 %25 }
  0x94   :  { %v27_v10 = vrot.slane %v26_v9, 4 }
  0x96   :  { %v28_v11 = vadd.f32 %v27_v10, %v26_v9 }
  0x98   :  { %v29_v12 = vrot.slane %v28_v11, 2 }
  0x9a   :  { %v30_v13 = vadd.f32 %v29_v12, %v28_v11 }
  0x9c   :  { %v31_v14 = vrot.slane %v30_v13, 1 }
  0x9e   :  { %v32_v15 = vadd.f32 %v31_v14, %v30_v13 }
  0xa0   :  { %53 = vpush %v32_v15 }
  0xd1   :  { %s54_s0 = spop %53 }
  0xd2   :  { %35 = sst [smem:[#allocation2]] %s54_s0 }
  0xd3   :  { %45 = dma.smem_to_hbm %s66_s1, 16, %s111_s3, [#allocation3]  }
  0xd4   :  { %64 = dma.done.wait [#allocation3], 16  }
  0xd5   :  { %65 = vsyncadd [#allocation3], 4294967280 }
  0xd6   :  { %51 = sfence }
  0xd7   :  { %52 = vsyncpa [#allocation3], 1 }

</bundles_post_ra>
